<compile_context>
chip_gen: v5e
topology: v5e:2x2
jax: 0.10.0
libtpu: 0.0.40
codegen_flags: <defaults>
</compile_context>

<pallas_src>
import functools
import math

import jax
import jax.numpy as jnp
from jax import lax
from jax.experimental import pallas as pl
from jax.experimental.pallas import tpu as pltpu

LN_EPS = 1e-5                      # torch.nn.LayerNorm default
_INV_SQRT2 = 1.0 / math.sqrt(2.0)  # exact erf-GELU constant


def _round_up(n, m):
    return ((n + m - 1) // m) * m


def _vmem_capacity_bytes():
    """Physical VMEM of the local chip (128 MiB on v5e/v6e, 64 MiB per TC on v7x)."""
    try:
        info = pltpu.get_tpu_info()
        cap = getattr(info, "vmem_capacity_bytes", None)
        if cap:
            return int(cap)
    except Exception:
        pass
    return 64 * 1024 * 1024  # conservative fallback (v7x-sized)


def _gelu(h, approximate):
    if approximate:
        # tanh-form GELU: transcendental goes to the EUP slot; use when VALU-bound (small C, v5e).
        return jax.nn.gelu(h, approximate=True)
    return 0.5 * h * (1.0 + lax.erf(h * _INV_SQRT2))  # torch.nn.GELU default (erf)


def _layernorm(x, gamma, beta, c_valid):
    """f32 LayerNorm over the last dim; exact under lane padding (c_valid <= x.shape[-1])."""
    cp = x.shape[-1]
    masked = c_valid != cp  # static
    if masked:
        col = lax.broadcasted_iota(jnp.int32, x.shape, dimension=x.ndim - 1)
        valid = col < c_valid
        x = jnp.where(valid, x, 0.0)
    inv_c = 1.0 / float(c_valid)
    mean = jnp.sum(x, axis=-1, keepdims=True) * inv_c
    centered = x - mean
    if masked:
        centered = jnp.where(valid, centered, 0.0)
    var = jnp.sum(centered * centered, axis=-1, keepdims=True) * inv_c
    xn = centered * lax.rsqrt(var + LN_EPS)
    # padded gamma/beta columns are zero -> padded xn columns stay exactly zero
    return xn * gamma + beta


# --------------------------------------------------------------------------------------------
# Streaming kernel: grid = (row_tiles [parallel], hidden_tiles [arbitrary/reduction]).
# Weights are streamed in (Cp, th)/(th, Cp) tiles; the (tm, Cp) f32 accumulator persists
# across the hidden axis. LayerNorm is computed once per row tile and cached in bf16 scratch.
# --------------------------------------------------------------------------------------------
def ffn_stream_kernel(x_ref, gamma_ref, beta_ref, w1_ref, b1_ref, w2_ref, b2_ref,
                      o_ref, acc_ref, xn_ref, *, c_valid, approx_gelu):
    j = pl.program_id(1)

    @pl.when(j == 0)
    def _init():
        x = x_ref[...].astype(jnp.float32)
        xn = _layernorm(x, gamma_ref[...].astype(jnp.float32),
                        beta_ref[...].astype(jnp.float32), c_valid)
        xn_ref[...] = xn.astype(xn_ref.dtype)
        acc_ref[...] = jnp.zeros_like(acc_ref)

    # Linear 1 on this hidden tile: (tm, Cp) @ (Cp, th) + b1, bf16 in / f32 acc.
    h = jnp.dot(xn_ref[...], w1_ref[...], preferred_element_type=jnp.float32)
    h = h + b1_ref[...].astype(jnp.float32)
    h = _gelu(h, approx_gelu)
    # TODO(synk): nn.Dropout(p=0.1) is identity in eval mode; training parity would need
    # pltpu.prng_seed + pltpu.prng_random_bits masking with 1/(1-p) scaling.

    # Linear 2 partial product: (tm, th) @ (th, Cp), accumulated in f32.
    acc_ref[...] += jnp.dot(h.astype(w2_ref.dtype), w2_ref[...],
                            preferred_element_type=jnp.float32)

    @pl.when(j == pl.num_programs(1) - 1)
    def _finalize():
        o_ref[...] = (acc_ref[...] + b2_ref[...].astype(jnp.float32)).astype(o_ref.dtype)


# --------------------------------------------------------------------------------------------
# Weight-resident kernel: grid = (row_tiles,). W1/W2 live fully in VMEM (read from HBM once);
# hidden tiles are streamed by an in-kernel fori_loop with a value-carried f32 accumulator.
# --------------------------------------------------------------------------------------------
def ffn_resident_kernel(x_ref, gamma_ref, beta_ref, w1_ref, b1_ref, w2_ref, b2_ref,
                        o_ref, *, c_valid, th, approx_gelu, unroll):
    x = x_ref[...].astype(jnp.float32)
    xn = _layernorm(x, gamma_ref[...].astype(jnp.float32),
                    beta_ref[...].astype(jnp.float32), c_valid)
    xn16 = xn.astype(w1_ref.dtype)
    tm, cp = x.shape
    hp = w1_ref.shape[1]
    n_h = hp // th

    def body(t, acc):
        h0 = pl.multiple_of(t * th, th)  # aligned dynamic slice into the resident weights
        h = jnp.dot(xn16, w1_ref[:, pl.ds(h0, th)], preferred_element_type=jnp.float32)
        h = h + b1_ref[:, pl.ds(h0, th)].astype(jnp.float32)
        h = _gelu(h, approx_gelu)
        return acc + jnp.dot(h.astype(w2_ref.dtype), w2_ref[pl.ds(h0, th), :],
                             preferred_element_type=jnp.float32)

    acc = lax.fori_loop(0, n_h, body, jnp.zeros((tm, cp), jnp.float32), unroll=unroll)
    o_ref[...] = (acc + b2_ref[...].astype(jnp.float32)).astype(o_ref.dtype)


def feedforward_pallas(x, gamma, beta, w1, b1, w2, b2, *,
                       tm=None, th=None, weight_resident=None,
                       approx_gelu=False, activation_dtype=None, weight_buffers=2):
    """x: (B, T, C). Weights stored as (in_features, out_features). Returns (B, T, C)."""
    B, T, C = x.shape
    H = w1.shape[1]
    rows = B * T

    # ---- lane-dense padded sizes; th prefers a divisor of round_up(H,128) (no dead columns) ----
    Cp = _round_up(C, 128)
    H128 = _round_up(H, 128)
    if th is None:
        if H128 <= 512:
            th = H128
        else:
            th = next((c for c in range(512, 127, -128) if H128 % c == 0), 512)
    else:
        th = min(_round_up(th, 128), H128)
    Hp = _round_up(H, th)

    in_dtype = activation_dtype or x.dtype          # optionally bf16 to halve x traffic/VMEM
    in_bytes = jnp.dtype(in_dtype).itemsize
    out_bytes = x.dtype.itemsize

    # ---- chip-aware VMEM budget (v5e/v6e: 128 MiB phys -> ~109 MiB; v7x: 64 MiB -> ~54 MiB) ----
    vmem_cap = _vmem_capacity_bytes()
    vmem_limit = int(0.85 * vmem_cap)

    # ---- per-grid-point VMEM estimates (double-buffered tiles + scratch) ----
    def est_stream(tm_):
        return (2 * tm_ * Cp * in_bytes + 2 * tm_ * Cp * out_bytes   # x / out tiles
                + 2 * Cp * th * 2 + 2 * th * Cp * 2                  # W1 / W2 tiles (bf16)
                + 2 * (3 * Cp * 4 + th * 4)                          # gamma, beta, b2, b1
                + tm_ * Cp * 4 + tm_ * Cp * 2)                       # acc f32 + xn bf16 scratch

    def est_resident(tm_):
        return (2 * tm_ * Cp * in_bytes + 2 * tm_ * Cp * out_bytes
                + 2 * (Cp * Hp + Hp * Cp) * 2                        # full W1/W2 (x2 conservative)
                + 2 * (3 * Cp * 4 + Hp * 4)
                + 2 * tm_ * th * 4)                                  # in-loop hidden intermediate

    # ---- row tile: AI on the weight stream = tm flops/byte -> push toward the ridge point,
    #      keep row-padding waste <= ~5%, and shrink until the config fits the VMEM budget. ----
    rows8 = _round_up(rows, 8)
    tm_target = tm if tm is not None else (1024 if vmem_cap >= 96 * 1024 * 1024 else 512)
    tm = min(_round_up(tm_target, 8), rows8)
    while tm > 128 and (_round_up(rows, tm) - rows) > max(0.05 * rows, 8):
        tm -= 128

    if weight_resident is None:
        weight_resident = est_resident(tm) <= vmem_limit
    est = est_resident if weight_resident else est_stream
    while tm > 128 and est(tm) > vmem_limit:
        tm -= 128
    rows_p = _round_up(rows, tm)

    # ---- pad & cast operands (zero padding keeps the math exact; bf16 weights for the MXU) ----
    x2d = jnp.pad(x.reshape(rows, C), ((0, rows_p - rows), (0, Cp - C))).astype(in_dtype)
    gamma_p = jnp.pad(gamma, (0, Cp - C)).reshape(1, Cp)
    beta_p = jnp.pad(beta, (0, Cp - C)).reshape(1, Cp)
    w1_p = jnp.pad(w1, ((0, Cp - C), (0, Hp - H))).astype(jnp.bfloat16)
    b1_p = jnp.pad(b1, (0, Hp - H)).reshape(1, Hp)
    w2_p = jnp.pad(w2, ((0, Hp - H), (0, Cp - C))).astype(jnp.bfloat16)
    b2_p = jnp.pad(b2, (0, Cp - C)).reshape(1, Cp)

    n_row_tiles = rows_p // tm
    weight_reads = 1 if weight_resident else n_row_tiles
    cost = pl.CostEstimate(
        flops=4 * rows_p * Cp * Hp,                       # two matmuls
        transcendentals=rows_p * Hp,                      # GELU
        bytes_accessed=(rows_p * Cp * (in_bytes + out_bytes)
                        + (int(w1_p.size) + int(w2_p.size)) * 2 * weight_reads),
    )
    out_shape = jax.ShapeDtypeStruct((rows_p, Cp), x.dtype)
    args = (x2d, gamma_p, beta_p, w1_p, b1_p, w2_p, b2_p)

    if weight_resident:
        n_h = Hp // th
        kernel = functools.partial(ffn_resident_kernel, c_valid=C, th=th,
                                   approx_gelu=approx_gelu, unroll=(n_h <= 8))
        out = pl.pallas_call(
            kernel,
            out_shape=out_shape,
            grid_spec=pltpu.PrefetchScalarGridSpec(
                num_scalar_prefetch=0,
                grid=(n_row_tiles,),
                in_specs=[
                    pl.BlockSpec((tm, Cp), lambda i: (i, 0)),   # x row tile
                    pl.BlockSpec((1, Cp), lambda i: (0, 0)),    # ln gamma
                    pl.BlockSpec((1, Cp), lambda i: (0, 0)),    # ln beta
                    pl.BlockSpec((Cp, Hp), lambda i: (0, 0)),   # W1 resident (fetched once)
                    pl.BlockSpec((1, Hp), lambda i: (0, 0)),    # b1
                    pl.BlockSpec((Hp, Cp), lambda i: (0, 0)),   # W2 resident (fetched once)
                    pl.BlockSpec((1, Cp), lambda i: (0, 0)),    # b2
                ],
                out_specs=pl.BlockSpec((tm, Cp), lambda i: (i, 0)),
            ),
            compiler_params=pltpu.CompilerParams(
                dimension_semantics=("parallel",),
                vmem_limit_bytes=vmem_limit,
            ),
            cost_estimate=cost,
        )(*args)
    else:
        kernel = functools.partial(ffn_stream_kernel, c_valid=C, approx_gelu=approx_gelu)
        # Optional deeper weight buffering (e.g. 3 on v5e if weight DMA is still exposed).
        w_mode = {} if weight_buffers == 2 else {"pipeline_mode": pl.Buffered(weight_buffers)}
        out = pl.pallas_call(
            kernel,
            out_shape=out_shape,
            grid_spec=pltpu.PrefetchScalarGridSpec(
                num_scalar_prefetch=0,
                grid=(n_row_tiles, Hp // th),
                in_specs=[
                    pl.BlockSpec((tm, Cp), lambda i, j: (i, 0)),           # x row tile
                    pl.BlockSpec((1, Cp), lambda i, j: (0, 0)),            # ln gamma
                    pl.BlockSpec((1, Cp), lambda i, j: (0, 0)),            # ln beta
                    pl.BlockSpec((Cp, th), lambda i, j: (0, j), **w_mode),  # W1 hidden tile
                    pl.BlockSpec((1, th), lambda i, j: (0, j)),            # b1 hidden tile
                    pl.BlockSpec((th, Cp), lambda i, j: (j, 0), **w_mode),  # W2 hidden tile
                    pl.BlockSpec((1, Cp), lambda i, j: (0, 0)),            # b2
                ],
                out_specs=pl.BlockSpec((tm, Cp), lambda i, j: (i, 0)),
                scratch_shapes=[
                    pltpu.VMEM((tm, Cp), jnp.float32),   # second-matmul accumulator
                    pltpu.VMEM((tm, Cp), jnp.bfloat16),  # cached LayerNorm output
                ],
            ),
            compiler_params=pltpu.CompilerParams(
                dimension_semantics=("parallel", "arbitrary"),
                vmem_limit_bytes=vmem_limit,
            ),
            cost_estimate=cost,
        )(*args)

    return out[:rows, :C].reshape(B, T, C)


def feedforward_ref(x, gamma, beta, w1, b1, w2, b2):
    """Pure-JAX f32 reference (eval-mode dropout = identity)."""
    mean = jnp.mean(x, axis=-1, keepdims=True)
    var = jnp.mean((x - mean) ** 2, axis=-1, keepdims=True)
    xn = (x - mean) / jnp.sqrt(var + LN_EPS) * gamma + beta
    h = xn @ w1 + b1
    h = 0.5 * h * (1.0 + lax.erf(h * _INV_SQRT2))
    return h @ w2 + b2


if __name__ == "__main__":
    def make_params(key, C, H):
        kw1, kb1, kw2, kb2 = jax.random.split(key, 4)
        bound1 = 1.0 / math.sqrt(C)
        w1 = jax.random.uniform(kw1, (C, H), jnp.float32, -bound1, bound1)
        b1 = jax.random.uniform(kb1, (H,), jnp.float32, -bound1, bound1)
        bound2 = 1.0 / math.sqrt(H)
        w2 = jax.random.uniform(kw2, (H, C), jnp.float32, -bound2, bound2)
        b2 = jax.random.uniform(kb2, (C,), jnp.float32, -bound2, bound2)
        gamma = jnp.ones((C,), jnp.float32)   # torch LayerNorm default init
        beta = jnp.zeros((C,), jnp.float32)
        return gamma, beta, w1, b1, w2, b2

    key = jax.random.PRNGKey(0)
    k1, k2, k3 = jax.random.split(key, 3)

    # Case 1: module shapes (n_embd=32, hidden=128); auto config -> weight-resident fast path.
    B, T, C = 2, 8, 32
    x = jax.random.normal(k1, (B, T, C), dtype=jnp.float32)
    params = make_params(k2, C, 4 * C)
    out = jax.block_until_ready(feedforward_pallas(x, *params))
    ref = feedforward_ref(x, *params)
    assert out.shape == (B, T, C)
    assert jnp.allclose(out, ref, atol=2e-2, rtol=2e-2), (
        f"resident path mismatch: max abs diff {jnp.max(jnp.abs(out - ref)):.3e}")

    # Case 2: odd feature dim (masked LayerNorm) + forced multi-tile grids on both paths.
    B2, T2, C2 = 2, 16, 48
    x2 = jax.random.normal(k3, (B2, T2, C2), dtype=jnp.float32)
    params2 = make_params(k2, C2, 4 * C2)
    ref2 = feedforward_ref(x2, *params2)
    out_s = jax.block_until_ready(
        feedforward_pallas(x2, *params2, tm=16, th=128, weight_resident=False))
    assert jnp.allclose(out_s, ref2, atol=2e-2, rtol=2e-2), (
        f"streaming path mismatch: max abs diff {jnp.max(jnp.abs(out_s - ref2)):.3e}")
    out_r = jax.block_until_ready(
        feedforward_pallas(x2, *params2, tm=16, th=128, weight_resident=True))
    assert jnp.allclose(out_r, ref2, atol=2e-2, rtol=2e-2), (
        f"resident multi-tile mismatch: max abs diff {jnp.max(jnp.abs(out_r - ref2)):.3e}")

    print("KERNEL_OK")
</pallas_src>

<mosaic_0001>
module attributes {stable_mosaic.version = 11 : i64} {
  func.func @ffn_resident_kernel(%arg0: i32, %arg1: memref<16x128xf32, #tpu.memory_space<vmem>>, %arg2: memref<1x128xf32, #tpu.memory_space<vmem>>, %arg3: memref<1x128xf32, #tpu.memory_space<vmem>>, %arg4: memref<128x128xbf16, #tpu.memory_space<vmem>>, %arg5: memref<1x128xf32, #tpu.memory_space<vmem>>, %arg6: memref<128x128xbf16, #tpu.memory_space<vmem>>, %arg7: memref<1x128xf32, #tpu.memory_space<vmem>>, %arg8: memref<16x128xf32, #tpu.memory_space<vmem>>) attributes {dimension_semantics = [#tpu.dimension_semantics<parallel>], iteration_bounds = array<i64: 1>, scalar_prefetch = 0 : i64, scratch_operands = 0 : i64, tpu.core_type = #tpu.core_type<tc>, window_params = [{transform_indices = @transform_0, window_bounds = array<i64: 16, 128>}, {pipeline_mode = #tpu.pipeline_mode<synchronous>, transform_indices = @transform_1, window_bounds = array<i64: 1, 128>}, {pipeline_mode = #tpu.pipeline_mode<synchronous>, transform_indices = @transform_2, window_bounds = array<i64: 1, 128>}, {pipeline_mode = #tpu.pipeline_mode<synchronous>, transform_indices = @transform_3, window_bounds = array<i64: 128, 128>}, {pipeline_mode = #tpu.pipeline_mode<synchronous>, transform_indices = @transform_4, window_bounds = array<i64: 1, 128>}, {pipeline_mode = #tpu.pipeline_mode<synchronous>, transform_indices = @transform_5, window_bounds = array<i64: 128, 128>}, {pipeline_mode = #tpu.pipeline_mode<synchronous>, transform_indices = @transform_6, window_bounds = array<i64: 1, 128>}, {transform_indices = @transform_7, window_bounds = array<i64: 16, 128>}]} {
    %c0 = arith.constant 0 : index
    %c0_0 = arith.constant 0 : index
    %0 = vector.load %arg1[%c0, %c0_0] : memref<16x128xf32, #tpu.memory_space<vmem>>, vector<16x128xf32>
    %c0_1 = arith.constant 0 : index
    %c0_2 = arith.constant 0 : index
    %1 = vector.load %arg2[%c0_1, %c0_2] : memref<1x128xf32, #tpu.memory_space<vmem>>, vector<1x128xf32>
    %c0_3 = arith.constant 0 : index
    %c0_4 = arith.constant 0 : index
    %2 = vector.load %arg3[%c0_3, %c0_4] : memref<1x128xf32, #tpu.memory_space<vmem>>, vector<1x128xf32>
    %3 = tpu.iota {dimensions = array<i32: 1>} : vector<16x128xi32>
    %c32_i32 = arith.constant 32 : i32
    %4 = vector.broadcast %c32_i32 : i32 to vector<16x128xi32>
    %5 = arith.cmpi slt, %3, %4 : vector<16x128xi32>
    %cst = arith.constant 0.000000e+00 : f32
    %6 = vector.broadcast %cst : f32 to vector<16x128xf32>
    %7 = arith.select %5, %0, %6 : vector<16x128xi1>, vector<16x128xf32>
    %cst_5 = arith.constant dense<0.000000e+00> : vector<16xf32>
    %8 = vector.multi_reduction <add>, %7, %cst_5 [1] : vector<16x128xf32> to vector<16xf32>
    %9 = vector.shape_cast %8 : vector<16xf32> to vector<16x1xf32>
    %cst_6 = arith.constant 3.125000e-02 : f32
    %10 = vector.broadcast %cst_6 : f32 to vector<16x1xf32>
    %11 = arith.mulf %9, %10 : vector<16x1xf32>
    %12 = vector.broadcast %11 : vector<16x1xf32> to vector<16x128xf32>
    %13 = arith.subf %7, %12 : vector<16x128xf32>
    %cst_7 = arith.constant 0.000000e+00 : f32
    %14 = vector.broadcast %cst_7 : f32 to vector<16x128xf32>
    %15 = arith.select %5, %13, %14 : vector<16x128xi1>, vector<16x128xf32>
    %16 = arith.mulf %15, %15 : vector<16x128xf32>
    %cst_8 = arith.constant dense<0.000000e+00> : vector<16xf32>
    %17 = vector.multi_reduction <add>, %16, %cst_8 [1] : vector<16x128xf32> to vector<16xf32>
    %18 = vector.shape_cast %17 : vector<16xf32> to vector<16x1xf32>
    %cst_9 = arith.constant 3.125000e-02 : f32
    %19 = vector.broadcast %cst_9 : f32 to vector<16x1xf32>
    %20 = arith.mulf %18, %19 : vector<16x1xf32>
    %cst_10 = arith.constant 9.99999974E-6 : f32
    %21 = vector.broadcast %cst_10 : f32 to vector<16x1xf32>
    %22 = arith.addf %20, %21 : vector<16x1xf32>
    %23 = math.rsqrt %22 : vector<16x1xf32>
    %24 = vector.broadcast %23 : vector<16x1xf32> to vector<16x128xf32>
    %25 = arith.mulf %15, %24 : vector<16x128xf32>
    %26 = vector.broadcast %1 : vector<1x128xf32> to vector<16x128xf32>
    %27 = arith.mulf %25, %26 : vector<16x128xf32>
    %28 = vector.broadcast %2 : vector<1x128xf32> to vector<16x128xf32>
    %29 = arith.addf %27, %28 : vector<16x128xf32>
    %30 = arith.truncf %29 : vector<16x128xf32> to vector<16x128xbf16>
    %cst_11 = arith.constant 0.000000e+00 : f32
    %31 = vector.broadcast %cst_11 : f32 to vector<16x128xf32>
    %c0_i32 = arith.constant 0 : i32
    %c128_i32 = arith.constant 128 : i32
    %32 = arith.muli %c0_i32, %c128_i32 : i32
    %33 = tpu.assume_multiple %32, 128 : i32
    %c0_12 = arith.constant 0 : index
    %34 = arith.index_cast %33 : i32 to index
    %35 = vector.load %arg4[%c0_12, %34] : memref<128x128xbf16, #tpu.memory_space<vmem>>, vector<128x128xbf16>
    %cst_13 = arith.constant dense<0.000000e+00> : vector<16x128xf32>
    %36 = tpu.matmul %30, %35, %cst_13 {dimension_numbers = #tpu.dot_dimension_numbers<[1], [0], [0], [1], [0, 0, 1, 1], [], []>} : vector<16x128xbf16>, vector<128x128xbf16>, vector<16x128xf32> -> vector<16x128xf32>
    %c0_14 = arith.constant 0 : index
    %37 = arith.index_cast %33 : i32 to index
    %38 = vector.load %arg5[%c0_14, %37] : memref<1x128xf32, #tpu.memory_space<vmem>>, vector<1x128xf32>
    %39 = vector.broadcast %38 : vector<1x128xf32> to vector<16x128xf32>
    %40 = arith.addf %36, %39 : vector<16x128xf32>
    %cst_15 = arith.constant 5.000000e-01 : f32
    %41 = vector.broadcast %cst_15 : f32 to vector<16x128xf32>
    %42 = arith.mulf %41, %40 : vector<16x128xf32>
    %cst_16 = arith.constant 0.707106769 : f32
    %43 = vector.broadcast %cst_16 : f32 to vector<16x128xf32>
    %44 = arith.mulf %40, %43 : vector<16x128xf32>
    %45 = math.erf %44 : vector<16x128xf32>
    %cst_17 = arith.constant 1.000000e+00 : f32
    %46 = vector.broadcast %cst_17 : f32 to vector<16x128xf32>
    %47 = arith.addf %46, %45 : vector<16x128xf32>
    %48 = arith.mulf %42, %47 : vector<16x128xf32>
    %49 = arith.truncf %48 : vector<16x128xf32> to vector<16x128xbf16>
    %50 = arith.index_cast %33 : i32 to index
    %c0_18 = arith.constant 0 : index
    %51 = vector.load %arg6[%50, %c0_18] : memref<128x128xbf16, #tpu.memory_space<vmem>>, vector<128x128xbf16>
    %cst_19 = arith.constant dense<0.000000e+00> : vector<16x128xf32>
    %52 = tpu.matmul %49, %51, %cst_19 {dimension_numbers = #tpu.dot_dimension_numbers<[1], [0], [0], [1], [0, 0, 1, 1], [], []>} : vector<16x128xbf16>, vector<128x128xbf16>, vector<16x128xf32> -> vector<16x128xf32>
    %53 = arith.addf %31, %52 : vector<16x128xf32>
    %c1_i32 = arith.constant 1 : i32
    %c0_20 = arith.constant 0 : index
    %c0_21 = arith.constant 0 : index
    %54 = vector.load %arg7[%c0_20, %c0_21] : memref<1x128xf32, #tpu.memory_space<vmem>>, vector<1x128xf32>
    %55 = vector.broadcast %54 : vector<1x128xf32> to vector<16x128xf32>
    %56 = arith.addf %53, %55 : vector<16x128xf32>
    %c0_22 = arith.constant 0 : index
    %c0_23 = arith.constant 0 : index
    %57 = vector.load %arg8[%c0_22, %c0_23] : memref<16x128xf32, #tpu.memory_space<vmem>>, vector<16x128xf32>
    tpu.vector_store %arg8[%c0_22, %c0_23], %56 {strides = array<i32>} : memref<16x128xf32, #tpu.memory_space<vmem>>, vector<16x128xf32>,
    return
  }
  func.func @transform_0(%arg0: i32) -> (i32, i32) {
    %c0_i32 = arith.constant 0 : i32
    %c0_i32_0 = arith.constant 0 : i32
    return %arg0, %c0_i32 : i32, i32
  }
  func.func @transform_1(%arg0: i32) -> (i32, i32) {
    %c0_i32 = arith.constant 0 : i32
    %c0_i32_0 = arith.constant 0 : i32
    %c0_i32_1 = arith.constant 0 : i32
    return %c0_i32, %c0_i32_0 : i32, i32
  }
  func.func @transform_2(%arg0: i32) -> (i32, i32) {
    %c0_i32 = arith.constant 0 : i32
    %c0_i32_0 = arith.constant 0 : i32
    %c0_i32_1 = arith.constant 0 : i32
    return %c0_i32, %c0_i32_0 : i32, i32
  }
  func.func @transform_3(%arg0: i32) -> (i32, i32) {
    %c0_i32 = arith.constant 0 : i32
    %c0_i32_0 = arith.constant 0 : i32
    %c0_i32_1 = arith.constant 0 : i32
    return %c0_i32, %c0_i32_0 : i32, i32
  }
  func.func @transform_4(%arg0: i32) -> (i32, i32) {
    %c0_i32 = arith.constant 0 : i32
    %c0_i32_0 = arith.constant 0 : i32
    %c0_i32_1 = arith.constant 0 : i32
    return %c0_i32, %c0_i32_0 : i32, i32
  }
  func.func @transform_5(%arg0: i32) -> (i32, i32) {
    %c0_i32 = arith.constant 0 : i32
    %c0_i32_0 = arith.constant 0 : i32
    %c0_i32_1 = arith.constant 0 : i32
    return %c0_i32, %c0_i32_0 : i32, i32
  }
  func.func @transform_6(%arg0: i32) -> (i32, i32) {
    %c0_i32 = arith.constant 0 : i32
    %c0_i32_0 = arith.constant 0 : i32
    %c0_i32_1 = arith.constant 0 : i32
    return %c0_i32, %c0_i32_0 : i32, i32
  }
  func.func @transform_7(%arg0: i32) -> (i32, i32) {
    %c0_i32 = arith.constant 0 : i32
    %c0_i32_0 = arith.constant 0 : i32
    return %arg0, %c0_i32 : i32, i32
  }
}

</mosaic_0001>

<bundles_post_ra>
// kernel: tpu_custom_call.1
= control target key start
LH: loop header
LB: loop body
LE: loop exit
PB: predicated region body
PF: predicated region fallthrough
CT: control target
= control target key end

     0   :  { %12 = vsyncpa [#allocation3], 0  ;;  %s758_s0 = inlined_call_operand.hbm [shape: f32[16,128], index: 0, kind: input, shape index: {}]   ;;  %s759_s1 = inlined_call_operand.hbm [shape: f32[1,128], index: 1, kind: input, shape index: {}]   ;;  %s760_s2 = inlined_call_operand.vmem [shape: f32[1,128], index: 2, kind: input, shape index: {}]   ;;  %s761_s3 = inlined_call_operand.hbm [shape: bf16[128,128], index: 3, kind: input, shape index: {}]   ;;  %s762_s4 = inlined_call_operand.vmem [shape: f32[1,128], index: 4, kind: input, shape index: {}]   ;;  %s763_s5 = inlined_call_operand.hbm [shape: bf16[128,128], index: 5, kind: input, shape index: {}]   ;;  %s764_s6 = inlined_call_operand.vmem [shape: f32[1,128], index: 6, kind: input, shape index: {}]   ;;  %s765_s7 = inlined_call_operand.hbm [shape: f32[16,128], index: 7, kind: output, shape index: {}]  }
   0x1   :  { %13 = vsyncpa [#allocation6], 0 }
   0x2   :  { %14 = vsyncpa [#allocation9], 0  ;;  %s34_s26 = sshll.u32 %s759_s1, 4  ;;  %s35_s26 = int_to_ptr.hbm [resolvable:$true] %s34_s26 }
   0x3   :  { %15 = vsyncpa [#allocation4], 0  ;;  %s657_s27 = smov [#allocation5]   ;;  %s20_s8 = sshll.u32 %s758_s0, 4  ;;  %s21_s8 = int_to_ptr.hbm [resolvable:$true] %s20_s8 }
   0x4   :  { %s36_s28 = sshll.u32 %s657_s27, 4  ;;  %s658_s9 = smov [#allocation2]   ;;  %s37_s28 = int_to_ptr.vmem [resolvable:$true] %s36_s28 }
   0x5   :  { %39 = dma.hbm_to_vmem [thread:$0]  %s35_s26, 16, %s37_s28, [#allocation6]  }
   0x6   :  { %s22_s10 = sshll.u32 %s658_s9, 4  ;;  %s659_s11 = smov 128   ;;  %s23_s10 = int_to_ptr.vmem [resolvable:$true] %s22_s10 }
   0x7   :  { %s660_s12 = smov 8   ;;  %s46_s14 = sshll.u32 %s761_s3, 4  ;;  %s47_s14 = int_to_ptr.hbm [resolvable:$true] %s46_s14 }
   0x8   :  { %28 = dma.hbm_to_vmem [thread:$0]  %s21_s8, 256, %s23_s10, [#allocation3], %s659_s11, %s659_s11, %s660_s12  }
   0x9   :  { %s661_s15 = smov [#allocation7]   ;;  %s61_s18 = sshll.u32 %s763_s5, 4  ;;  %s62_s18 = int_to_ptr.hbm [resolvable:$true] %s61_s18 }
   0xa   :  { %s48_s16 = sshll.u32 %s661_s15, 4  ;;  %s662_s19 = smov 64   ;;  %s49_s16 = int_to_ptr.vmem [resolvable:$true] %s48_s16 }
   0xb   :  { %s663_s20 = smov 4   ;;  %s664_s21 = smov [#allocation8]  }
   0xc   :  { %54 = dma.hbm_to_vmem [thread:$0]  %s47_s14, 1024, %s49_s16, [#allocation6], %s662_s19, %s662_s19, %s663_s20  }
   0xd   :  { %s63_s22 = sshll.u32 %s664_s21, 4  ;;  %s64_s22 = int_to_ptr.vmem [resolvable:$true] %s63_s22 }
   0xe   :  { %69 = dma.hbm_to_vmem [thread:$0]  %s62_s18, 1024, %s64_s22, [#allocation9], %s662_s19, %s662_s19, %s663_s20  }
   0xf   :  { %649 = dma.done.wait [#allocation3], 256  }
  0x10   :  { %650 = vsyncadd [#allocation3], 4294967040 }
  0x11   :  { %651 = dma.done.wait [#allocation6], 1040  }
  0x12   :  { %652 = vsyncadd [#allocation6], 4294966256 }
  0x13   :  { %653 = dma.done.wait [#allocation9], 1024  }
  0x14   :  { %654 = vsyncadd [#allocation9], 4294966272  ;;  %v92_v0 = vlaneseq  ;;  %v88_v2 = vld [vmem:[#allocation2] sm:$0xff]  ;;  %v89_v4 = vld [vmem:[#allocation2 + $0x8] sm:$0xff]  ;;  %s665_s25 = smov [#allocation10]   ;;  %s411_s29 = sshll.u32 %s765_s7, 4  ;;  %s412_s29 = int_to_ptr.hbm [resolvable:$true] %s411_s29 }
  0x15   :  { %v499_v16 = vld [vmem:[#allocation7 + $0x38] sm:$0xff]  ;;  %v498_v17 = vld [vmem:[#allocation7 + $0x30] sm:$0xff]  ;;  %v497_v18 = vld [vmem:[#allocation7 + $0x28] sm:$0xff]  ;;  %s409_s26 = sshll.u32 %s665_s25, 4  ;;  %s410_s26 = int_to_ptr.vmem [resolvable:$true] %s409_s26 }
  0x16   :  { %v93_v1 = vand.u32 127, %v92_v0  ;;  %218 = vmatpush.bf16.msra.mxu0 %v499_v16  ;;  %v496_v19 = vld [vmem:[#allocation7 + $0x20] sm:$0xff]  ;;  %v495_v20 = vld [vmem:[#allocation7 + $0x18] sm:$0xff]  ;;  %v494_v21 = vld [vmem:[#allocation7 + $0x10] sm:$0xff] }
  0x17   :  { %v493_v22 = vld [vmem:[#allocation7 + $0x8] sm:$0xff]  ;;  %v492_v24 = vld [vmem:[#allocation7] sm:$0xff]  ;;  %v517_v43 = vld [vmem:[#allocation5] ss:$0 sm:$0xff] }
  0x18   :  { %vm94_vm0 = vcmp.lt.s32.totalorder %v93_v1, 32  ;;  %v518_v48 = vld [vmem:[%s760_s2] ss:$0 sm:$0xff]  ;;  %v507_v54 = vld [vmem:[#allocation8 + $0x38] sm:$0xff]  ;;  %v506_v58 = vld [vmem:[#allocation8 + $0x30] sm:$0xff] }
  0x19   :  { %v95_v3 = vsel %vm94_vm0, %v88_v2, 0.0  ;;  %v96_v5 = vsel %vm94_vm0, %v89_v4, 0.0  ;;  %v519_v53 = vld [vmem:[%s762_s4] ss:$0 sm:$0xff]  ;;  %389 = vmatpush.bf16.msra.mxu1 %v507_v54  ;;  %v504_v1 = vld [vmem:[#allocation8 + $0x20] sm:$0xff] }
  0x1a   :  { %97 = vadd.xlane.f32.xlu0 %v95_v3  ;;  %219 = vmatpush.bf16.msra.mxu0 %v498_v17  ;;  %v505_v60 = vld [vmem:[#allocation8 + $0x28] sm:$0xff] }
  0x1d   :  { %390 = vmatpush.bf16.msra.mxu1 %v506_v58 }
  0x1e   :  { %220 = vmatpush.bf16.msra.mxu0 %v497_v18 }
  0x21   :  { %391 = vmatpush.bf16.msra.mxu1 %v505_v60 }
  0x22   :  { %99 = vadd.xlane.f32.xlu0 %v96_v5  ;;  %221 = vmatpush.bf16.msra.mxu0 %v496_v19 }
  0x25   :  { %392 = vmatpush.bf16.msra.mxu1 %v504_v1 }
  0x26   :  { %222 = vmatpush.bf16.msra.mxu0 %v495_v20 }
  0x2a   :  { %223 = vmatpush.bf16.msra.mxu0 %v494_v21  ;;  %v501_v21 = vld [vmem:[#allocation8 + $0x8] sm:$0xff] }
  0x2e   :  { %224 = vmatpush.bf16.msra.mxu0 %v493_v22 }
  0x32   :  { %225 = vmatpush.bf16.msra.mxu0 %v492_v24 }
  0x8d   :  { %v98_v6 = vpop.xlane.xlu0 %97 }
  0x8e   :  { %v101_v7 = vmul.f32 0.03125, %v98_v6 }
  0x90   :  { %v103_v8 = vsub.f32 %v95_v3, %v101_v7  ;;  %v503_v7 = vld [vmem:[#allocation8 + $0x18] sm:$0xff] }
  0x91   :  { %393 = vmatpush.bf16.msra.mxu1 %v503_v7 }
  0x92   :  { %v105_v9 = vsel %vm94_vm0, %v103_v8, 0.0 }
  0x93   :  { %v107_v10 = vmul.f32 %v105_v9, %v105_v9 }
  0x95   :  { %109 = vadd.xlane.f32.xlu1 %v107_v10  ;;  %v100_v11 = vpop.xlane.xlu0 %99 }
  0x96   :  { %v102_v12 = vmul.f32 0.03125, %v100_v11 }
  0x98   :  { %v104_v13 = vsub.f32 %v96_v5, %v102_v12 }
  0x9a   :  { %v106_v14 = vsel %vm94_vm0, %v104_v13, 0.0  ;;  %v502_v13 = vld [vmem:[#allocation8 + $0x10] sm:$0xff] }
  0x9b   :  { %v108_v15 = vmul.f32 %v106_v14, %v106_v14  ;;  %394 = vmatpush.bf16.msra.mxu1 %v502_v13 }
  0x9d   :  { %111 = vadd.xlane.f32.xlu1 %v108_v15 }
  0x9f   :  { %395 = vmatpush.bf16.msra.mxu1 %v501_v21 }
 0x108   :  { %v110_v23 = vpop.xlane.xlu1 %109 }
 0x109   :  { %v113_v25 = vmul.f32 0.03125, %v110_v23 }
 0x10b   :  { %v115_v26 = vadd.f32 1e-05, %v113_v25 }
 0x10d   :  { %521 = vrsqrt.f32 %v115_v26  ;;  %vm123_vm2 = vweird.f32 %v115_v26 }
 0x110   :  { %v112_v27 = vpop.xlane.xlu1 %111 }
 0x111   :  { %v114_v28 = vmul.f32 0.03125, %v112_v27 }
 0x113   :  { %v522_v29 = vpop.eup %521  ;;  %v116_v30 = vadd.f32 1e-05, %v114_v28  ;;  %v500_v28 = vld [vmem:[#allocation8] sm:$0xff] }
 0x114   :  { %v118_v31 = vmul.f32 %v522_v29, %v115_v26  ;;  %vm124_vm1 = vweird.f32 %v522_v29  ;;  %396 = vmatpush.bf16.msra.mxu1 %v500_v28 }
 0x115   :  { %523 = vrsqrt.f32 %v116_v30  ;;  %vm125_vm3 = vmor %vm123_vm2, %vm124_vm1  ;;  %vm133_vm5 = vweird.f32 %v116_v30 }
 0x116   :  { %v119_v32 = vmul.f32 %v522_v29, %v118_v31 }
 0x118   :  { %v120_v33 = vmul.f32 0.5, %v119_v32 }
 0x11a   :  { %v121_v34 = vsub.f32 1.5, %v120_v33 }
 0x11b   :  { %v524_v35 = vpop.eup %523 }
 0x11c   :  { %v122_v36 = vmul.f32 %v522_v29, %v121_v34  ;;  %v128_v37 = vmul.f32 %v524_v35, %v116_v30  ;;  %vm134_vm4 = vweird.f32 %v524_v35 }
 0x11d   :  { %vm135_vm6 = vmor %vm133_vm5, %vm134_vm4 }
 0x11e   :  { %v129_v38 = vmul.f32 %v524_v35, %v128_v37  ;;  %v126_v40 = vsel %vm125_vm3, %v522_v29, %v122_v36 }
 0x11f   :  { %v137_v42 = vmul.f32 %v126_v40, %v105_v9 }
 0x120   :  { %v130_v39 = vmul.f32 0.5, %v129_v38 }
 0x121   :  { %v142_v47 = vmul.f32 %v517_v43, %v137_v42 }
 0x122   :  { %v131_v41 = vsub.f32 1.5, %v130_v39 }
 0x123   :  { %v147_v50 = vadd.f32 %v518_v48, %v142_v47 }
 0x124   :  { %v132_v44 = vmul.f32 %v524_v35, %v131_v41 }
 0x126   :  { %v136_v45 = vsel %vm135_vm6, %v524_v35, %v132_v44 }
 0x127   :  { %v138_v46 = vmul.f32 %v136_v45, %v106_v14 }
 0x129   :  { %v143_v49 = vmul.f32 %v517_v43, %v138_v46 }
 0x12b   :  { %v148_v51 = vadd.f32 %v518_v48, %v143_v49 }
 0x12d   :  { %v149_v52 = vpack.c.bf16 %v148_v51, %v147_v50 }
 0x12f   :  { %226 = vmatmul.bf16.vlgmr.msra.gmra.mxu0 %v149_v52 }
 0x1ac   :  { %v227_v55 = vpop.f32.mrf.mxu0 }
 0x1ad   :  { %v731_v56 = vadd.f32 %v519_v53, %v227_v55 }
 0x1af   :  { %v734_v57 = vmul.f32 0.70710677, %v731_v56 }
 0x1b1   :  { %v236_v59 = vmul.f32 %v734_v57, %v734_v57 }
 0x1b3   :  { %v237_v61 = vmin.f32 %v236_v59, 16.0 }
 0x1b4   :  { %v229_v62 = vpop.f32.mrf.mxu0 }
 0x1b5   :  { %v238_v63 = vmul.f32 2.1237322e-06, %v237_v61  ;;  %v738_v0 = vadd.f32 %v519_v53, %v229_v62  ;;  %v249_v2 = vmul.f32 3.8918573e-05, %v237_v61 }
 0x1b7   :  { %v239_v3 = vadd.f32 0.00028619796, %v238_v63  ;;  %v741_v4 = vmul.f32 0.70710677, %v738_v0  ;;  %v250_v5 = vadd.f32 0.001143296, %v249_v2 }
 0x1b9   :  { %v276_v6 = vmul.f32 %v741_v4, %v741_v4  ;;  %v240_v8 = vmul.f32 %v239_v3, %v237_v61  ;;  %v251_v9 = vmul.f32 %v250_v5, %v237_v61 }
 0x1bb   :  { %v277_v10 = vmin.f32 %v276_v6, 16.0  ;;  %v252_v11 = vadd.f32 0.014752088, %v251_v9  ;;  %v241_v15 = vadd.f32 0.0036580483, %v240_v8 }
 0x1bd   :  { %v278_v12 = vmul.f32 2.1237322e-06, %v277_v10  ;;  %v289_v14 = vmul.f32 3.8918573e-05, %v277_v10  ;;  %v253_v16 = vmul.f32 %v252_v11, %v237_v61  ;;  %v242_v23 = vmul.f32 %v241_v15, %v237_v61 }
 0x1be   :  { %v233_v15 = vmul.f32 0.5, %v738_v0 }
 0x1bf   :  { %v279_v17 = vadd.f32 0.00028619796, %v278_v12  ;;  %v290_v18 = vadd.f32 0.001143296, %v289_v14  ;;  %v254_v19 = vadd.f32 0.112945676, %v253_v16 }
 0x1c0   :  { %v243_v30 = vadd.f32 0.05243302, %v242_v23  ;;  %v232_v14 = vmul.f32 0.5, %v731_v56 }
 0x1c1   :  { %v280_v20 = vmul.f32 %v279_v17, %v277_v10  ;;  %v291_v22 = vmul.f32 %v290_v18, %v277_v10  ;;  %v255_v24 = vmul.f32 %v254_v19, %v237_v61 }
 0x1c2   :  { %v244_v36 = vmul.f32 %v243_v30, %v237_v61 }
 0x1c3   :  { %v281_v25 = vadd.f32 0.0036580483, %v280_v20  ;;  %v292_v26 = vadd.f32 0.014752088, %v291_v22  ;;  %v256_v27 = vadd.f32 0.4994258, %v255_v24 }
 0x1c4   :  { %v245_v40 = vadd.f32 0.18741608, %v244_v36 }
 0x1c5   :  { %v293_v29 = vmul.f32 %v292_v26, %v277_v10  ;;  %v257_v31 = vmul.f32 %v256_v27, %v237_v61  ;;  %v282_v32 = vmul.f32 %v281_v25, %v277_v10 }
 0x1c6   :  { %v246_v45 = vmul.f32 %v245_v40, %v237_v61 }
 0x1c7   :  { %v294_v33 = vadd.f32 0.112945676, %v293_v29  ;;  %v258_v34 = vadd.f32 1.0, %v257_v31  ;;  %v283_v37 = vadd.f32 0.05243302, %v282_v32 }
 0x1c8   :  { %v247_v51 = vadd.f32 1.1283791, %v246_v45 }
 0x1c9   :  { %v295_v35 = vmul.f32 %v294_v33, %v277_v10  ;;  %525 = vrcp.f32 %v258_v34  ;;  %v284_v41 = vmul.f32 %v283_v37, %v277_v10  ;;  %v270_v48 = vand.u32 2147483648, %v258_v34 }
 0x1ca   :  { %v268_v50 = vand.u32 2147483647, %v258_v34  ;;  %vm264_vm8 = vweird.f32 %v258_v34  ;;  %v248_v60 = vmul.f32 %v247_v51, %v734_v57 }
 0x1cb   :  { %v296_v38 = vadd.f32 0.4994258, %v295_v35  ;;  %v285_v46 = vadd.f32 0.18741608, %v284_v41  ;;  %v271_v55 = vor.u32 1.1754944e-38, %v270_v48 }
 0x1cc   :  { %vm269_vm10 = vcmp.eq.f32.partialorder %v268_v50, 8.507059e+37 }
 0x1cd   :  { %v297_v39 = vmul.f32 %v296_v38, %v277_v10  ;;  %v286_v53 = vmul.f32 %v285_v46, %v277_v10 }
 0x1cf   :  { %v298_v42 = vadd.f32 1.0, %v297_v39  ;;  %v526_v43 = vpop.eup %525  ;;  %v287_v63 = vadd.f32 1.1283791, %v286_v53 }
 0x1d0   :  { %v260_v44 = vmul.f32 %v526_v43, %v258_v34  ;;  %vm265_vm7 = vweird.f32 %v526_v43 }
 0x1d1   :  { %527 = vrcp.f32 %v298_v42  ;;  %vm266_vm9 = vmor %vm264_vm8, %vm265_vm7  ;;  %v310_v1 = vand.u32 2147483648, %v298_v42  ;;  %v308_v5 = vand.u32 2147483647, %v298_v42  ;;  %vm304_vm12 = vweird.f32 %v298_v42 }
 0x1d2   :  { %v261_v47 = vsub.f32 1.0, %v260_v44  ;;  %v288_v8 = vmul.f32 %v287_v63, %v741_v4  ;;  %v520_v4 = vld [vmem:[%s764_s6] ss:$0 sm:$0xff] }
 0x1d3   :  { %v311_v7 = vor.u32 1.1754944e-38, %v310_v1  ;;  %vm309_vm14 = vcmp.eq.f32.partialorder %v308_v5, 8.507059e+37 }
 0x1d4   :  { %v262_v49 = vmul.f32 %v526_v43, %v261_v47 }
 0x1d6   :  { %v263_v54 = vadd.f32 %v526_v43, %v262_v49 }
 0x1d7   :  { %v528_v52 = vpop.eup %527 }
 0x1d8   :  { %v300_v58 = vmul.f32 %v528_v52, %v298_v42  ;;  %v267_v59 = vsel %vm266_vm9, %v526_v43, %v263_v54  ;;  %vm305_vm11 = vweird.f32 %v528_v52 }
 0x1d9   :  { %v272_v62 = vsel %vm269_vm10, %v271_v55, %v267_v59  ;;  %vm306_vm13 = vmor %vm304_vm12, %vm305_vm11 }
 0x1da   :  { %v301_v61 = vsub.f32 1.0, %v300_v58  ;;  %v273_v2 = vmul.f32 %v272_v62, %v248_v60 }
 0x1dc   :  { %v302_v3 = vmul.f32 %v528_v52, %v301_v61  ;;  %v458_v9 = vclamps-f32 %v273_v2, 1.0 }
 0x1de   :  { %v303_v6 = vadd.f32 %v528_v52, %v302_v3  ;;  %v316_v13 = vadd.f32 1.0, %v458_v9 }
 0x1e0   :  { %v307_v10 = vsel %vm306_vm13, %v528_v52, %v303_v6  ;;  %v318_v17 = vmul.f32 %v316_v13, %v232_v14 }
 0x1e1   :  { %v312_v11 = vsel %vm309_vm14, %v311_v7, %v307_v10 }
 0x1e2   :  { %v313_v12 = vmul.f32 %v312_v11, %v288_v8 }
 0x1e4   :  { %v459_v57 = vclamps-f32 %v313_v12, 1.0 }
 0x1e6   :  { %v317_v16 = vadd.f32 1.0, %v459_v57 }
 0x1e8   :  { %v319_v18 = vmul.f32 %v317_v16, %v233_v15 }
 0x1ea   :  { %v320_v19 = vpack.c.bf16 %v319_v18, %v318_v17 }
 0x1ec   :  { %397 = vmatmul.bf16.vlgmr.msra.gmra.mxu1 %v320_v19 }
 0x269   :  { %v398_v20 = vpop.f32.mrf.mxu1 }
 0x26a   :  { %v399_v21 = vadd.f32 %v520_v4, %v398_v20 }
 0x26c   :  { %403 = vst [vmem:[#allocation10] sm:$0xff] %v399_v21 }
 0x271   :  { %v400_v56 = vpop.f32.mrf.mxu1 }
 0x272   :  { %v401_v0 = vadd.f32 %v520_v4, %v400_v56 }
 0x274   :  { %404 = vst [vmem:[#allocation10 + $0x8] sm:$0xff] %v401_v0 }
 0x275   :  { %417 = dma.vmem_to_hbm [thread:$0]  %s410_s26, 256, %s412_s29, [#allocation4], %s659_s11, %s659_s11, %s660_s12  }
 0x276   :  { %655 = dma.done.wait [#allocation4], 256  }
 0x277   :  { %656 = vsyncadd [#allocation4], 4294967040 }
 0x278   :  { %422 = vsyncpa [#allocation3], 1 }
 0x279   :  { %423 = vsyncpa [#allocation6], 1 }
 0x27a   :  { %424 = vsyncpa [#allocation9], 1 }
 0x27b   :  { %425 = vsyncpa [#allocation4], 1 }

</bundles_post_ra>
